<compile_context>
chip_gen: v6e
topology: v6e:2x2x1
jax: 0.10.0
libtpu: 0.0.40
codegen_flags: <defaults>
</compile_context>

<pallas_src>
import jax
import jax.numpy as jnp
from jax.experimental import pallas as pl
from jax.experimental.pallas import tpu as pltpu

_EPS = 1e-5


# ------------------------------ layout plan -------------------------------- #

def _plan(shape):
    """Pick a copy-free 2D (rows, cols) reinterpretation of the NCHW tensor and a row tile."""
    N, C, H, W = shape
    total = N * C * H * W

    rows = cols = None
    # Prefer a lane-dense layout when it is a free reshape.
    for lane in (512, 256, 128):
        if total % lane == 0 and total // lane >= 8:
            rows, cols = total // lane, lane
            break
    if rows is None:
        if total % 128 == 0:
            rows, cols = total // 128, 128
        else:
            # Natural free reshapes of contiguous NCHW; prefer a >=128-wide lane dim.
            for r, c in ((N * C * H, W), (N * C, H * W), (N, C * H * W)):
                if c >= 128:
                    rows, cols = r, c
                    break
            else:
                rows, cols = N * C * H, W
            # TODO(synk): a single row wider than ~1M elements would need a padded fallback
            #             (block would exceed VMEM); not needed for this module's test shapes.

    # Row tile: ~<=1 MiB per stream block (keeps 4 streams x 2 buffers under v5e's 16 MiB).
    tm_cap = max(8, min(512, ((1 << 20) // (cols * 4)) // 8 * 8))
    tm = rows if rows <= tm_cap else tm_cap
    num_tiles = -(-rows // tm)
    return total, rows, cols, tm, num_tiles


# ------------------------------ kernels ------------------------------------ #

def _make_small_kernel(total):
    """Single grid-step path: whole problem resident in VMEM, one pass."""
    inv_n = 1.0 / float(total)

    def kernel(p_ref, x_ref, y_ref, z_ref, o_ref):
        # p_ref (SMEM f32[12]) = [w1,b1,w2,b2,w3,b3, g1,be1,g2,be2,g3,be3]
        def branch(ref, w, g, beta):
            a = ref[...].astype(jnp.float32)
            s_col = jnp.sum(a, axis=0, keepdims=True)           # (1, cols)
            ss_col = jnp.sum(a * a, axis=0, keepdims=True)
            mean = jnp.sum(s_col, axis=1, keepdims=True) * inv_n   # (1, 1)
            ex2 = jnp.sum(ss_col, axis=1, keepdims=True) * inv_n
            var = jnp.maximum(ex2 - mean * mean, 0.0)
            scale = w * g * jax.lax.rsqrt(w * w * var + _EPS)      # conv bias cancels in BN
            shift = beta - mean * scale
            return jnp.maximum(a * scale + shift, 0.0)

        bx = branch(x_ref, p_ref[0], p_ref[6], p_ref[7])
        by = branch(y_ref, p_ref[2], p_ref[8], p_ref[9])
        bz = branch(z_ref, p_ref[4], p_ref[10], p_ref[11])
        o_ref[...] = (bx + by + bz).astype(o_ref.dtype)

    return kernel


def _make_fused_kernel(rows, cols, tm, num_tiles, total):
    """Fused two-phase kernel: phase 0 = masked per-lane moments into VMEM accumulator,
    phase 1 = analytic conv+BN fold + normalize/relu/add stream."""
    inv_n = 1.0 / float(total)
    ragged = (rows % tm) != 0

    def kernel(p_ref, x_ref, y_ref, z_ref, o_ref, acc_ref):
        phase = pl.program_id(0)
        i = pl.program_id(1)

        @pl.when(phase == 0)
        def _stats_phase():
            @pl.when(i == 0)
            def _init():
                acc_ref[...] = jnp.zeros_like(acc_ref)

            def moments(ref):
                a = ref[...].astype(jnp.float32)
                if ragged:
                    # Mask rows past the true extent (OOB rows of a partial tile hold garbage).
                    row = jax.lax.broadcasted_iota(jnp.int32, (tm, cols), 0)
                    a = jnp.where(i * tm + row < rows, a, 0.0)
                return (jnp.sum(a, axis=0, keepdims=True),
                        jnp.sum(a * a, axis=0, keepdims=True))

            sx, ssx = moments(x_ref)
            sy, ssy = moments(y_ref)
            sz, ssz = moments(z_ref)
            acc_ref[0:1, :] += sx
            acc_ref[1:2, :] += ssx
            acc_ref[2:3, :] += sy
            acc_ref[3:4, :] += ssy
            acc_ref[4:5, :] += sz
            acc_ref[5:6, :] += ssz

        @pl.when(phase == 1)
        def _normalize_phase():
            tot = jnp.sum(acc_ref[...], axis=1, keepdims=True)   # (8, 1) branch totals

            def fold(r, w, g, beta):
                mean = tot[r:r + 1, :] * inv_n                    # (1, 1)
                ex2 = tot[r + 1:r + 2, :] * inv_n
                var = jnp.maximum(ex2 - mean * mean, 0.0)
                scale = w * g * jax.lax.rsqrt(w * w * var + _EPS)
                shift = beta - mean * scale
                return scale, shift

            sxc, txc = fold(0, p_ref[0], p_ref[6], p_ref[7])
            syc, tyc = fold(2, p_ref[2], p_ref[8], p_ref[9])
            szc, tzc = fold(4, p_ref[4], p_ref[10], p_ref[11])

            xv = x_ref[...].astype(jnp.float32)
            yv = y_ref[...].astype(jnp.float32)
            zv = z_ref[...].astype(jnp.float32)
            out = (jnp.maximum(xv * sxc + txc, 0.0)
                   + jnp.maximum(yv * syc + tyc, 0.0)
                   + jnp.maximum(zv * szc + tzc, 0.0))
            o_ref[...] = out.astype(o_ref.dtype)

    return kernel


# ------------------------------ wrapper ------------------------------------ #

def multiple_inputs_conv_second_moment_net(x, y, z, params):
    """x, y, z: NCHW arrays with C == 1. params: f32[12] =
    [w1, b1, w2, b2, w3, b3, g1, be1, g2, be2, g3, be3]."""
    N, C, H, W = x.shape
    assert C == 1, "module uses single-channel 1x1 convs"
    total, rows, cols, tm, num_tiles = _plan(x.shape)
    out_dtype = x.dtype
    p32 = params.astype(jnp.float32)

    # Free reinterpretations (no pad, no data movement).
    xt = x.reshape(rows, cols)
    yt = y.reshape(rows, cols)
    zt = z.reshape(rows, cols)

    smem_spec = pl.BlockSpec(memory_space=pltpu.MemorySpace.SMEM)

    if num_tiles == 1:
        # Single launch, single grid step; everything stays in VMEM (3 reads + 1 write).
        out2d = pl.pallas_call(
            _make_small_kernel(total),
            out_shape=jax.ShapeDtypeStruct((rows, cols), out_dtype),
            grid=(1,),
            in_specs=[smem_spec,
                      pl.BlockSpec((rows, cols), lambda i: (0, 0)),
                      pl.BlockSpec((rows, cols), lambda i: (0, 0)),
                      pl.BlockSpec((rows, cols), lambda i: (0, 0))],
            out_specs=pl.BlockSpec((rows, cols), lambda i: (0, 0)),
            compiler_params=pltpu.CompilerParams(dimension_semantics=("arbitrary",)),
        )(p32, xt, yt, zt)
    else:
        data_spec = pl.BlockSpec((tm, cols), lambda ph, i: (i, 0))
        # Output block index is pinned to 0 during the stats phase so each output block is
        # DMA'd back exactly once (with real data, during the normalize phase).
        out_spec = pl.BlockSpec((tm, cols), lambda ph, i: (i * ph, 0))
        out2d = pl.pallas_call(
            _make_fused_kernel(rows, cols, tm, num_tiles, total),
            out_shape=jax.ShapeDtypeStruct((rows, cols), out_dtype),
            grid=(2, num_tiles),                       # (phase, row-tile)
            in_specs=[smem_spec, data_spec, data_spec, data_spec],
            out_specs=out_spec,
            scratch_shapes=[pltpu.VMEM((8, cols), jnp.float32)],   # persistent moment accumulator
            compiler_params=pltpu.CompilerParams(
                dimension_semantics=("arbitrary", "arbitrary")),
        )(p32, xt, yt, zt)

    # TODO(synk): PyTorch training-mode BN also updates running_mean/var buffers as a side
    #             effect; that has no effect on the forward output and is not emulated here.
    return out2d.reshape(N, C, H, W)


# ------------------------------ reference ----------------------------------- #

def _reference(x, y, z, params):
    """Pure-JAX reference mirroring the PyTorch forward (training-mode BN)."""
    def branch(a, w, b, gamma, beta):
        c = a * w + b
        mean = jnp.mean(c)                      # single channel -> over N,H,W
        var = jnp.mean((c - mean) ** 2)         # biased variance
        xn = (c - mean) / jnp.sqrt(var + _EPS) * gamma + beta
        return jnp.maximum(xn, 0.0)

    p = params
    x1 = branch(x, p[0], p[1], p[6], p[7])
    y1 = branch(y, p[2], p[3], p[8], p[9])
    z1 = branch(z, p[4], p[5], p[10], p[11])
    return x1 + y1 + z1


# -------------------------------- main --------------------------------------- #

if __name__ == "__main__":
    key = jax.random.PRNGKey(0)
    keys = jax.random.split(key, 12)

    fwd = jax.jit(multiple_inputs_conv_second_moment_net)

    default_params = jnp.array(
        [1.0, 0.0, 1.0, 0.0, 1.0, 0.0,     # conv (w1,b1,w2,b2,w3,b3) as constructed
         1.0, 0.0, 1.0, 0.0, 1.0, 0.0],    # bn   (g1,be1,g2,be2,g3,be3) as constructed
        dtype=jnp.float32)
    fancy_params = jnp.array(
        [0.7, 0.3, -1.2, 0.1, 2.0, -0.4,
         1.5, 0.2, 0.8, -0.1, 1.1, 0.05], dtype=jnp.float32)

    cases = [
        ((2, 1, 16, 16), default_params),     # fast path, lane-dense (4, 128)
        ((3, 1, 10, 20), fancy_params),       # fast path, natural (3, 200) layout (no pad)
        ((13, 1, 128, 160), fancy_params),    # fused 2-phase path, ragged last tile (520 rows)
        ((16, 1, 128, 256), default_params),  # fused 2-phase path, evenly tiled (1024 rows)
    ]
    for idx, (shape, params) in enumerate(cases):
        k1, k2, k3 = keys[3 * idx], keys[3 * idx + 1], keys[3 * idx + 2]
        x = jax.random.normal(k1, shape, dtype=jnp.float32)
        y = jax.random.normal(k2, shape, dtype=jnp.float32) * 2.0 + 0.5
        z = jax.random.normal(k3, shape, dtype=jnp.float32) - 1.0
        out = jax.block_until_ready(fwd(x, y, z, params))
        ref = _reference(x, y, z, params)
        assert out.shape == shape
        assert jnp.allclose(out, ref, atol=2e-4, rtol=2e-4), f"mismatch vs reference (case {idx})"

    print("KERNEL_OK")
</pallas_src>

<mosaic_0001>
module attributes {stable_mosaic.version = 11 : i64} {
  func.func @kernel(%arg0: i32, %arg1: memref<12xf32, #tpu.memory_space<smem>>, %arg2: memref<4x128xf32, #tpu.memory_space<vmem>>, %arg3: memref<4x128xf32, #tpu.memory_space<vmem>>, %arg4: memref<4x128xf32, #tpu.memory_space<vmem>>, %arg5: memref<4x128xf32, #tpu.memory_space<vmem>>) attributes {dimension_semantics = [#tpu.dimension_semantics<arbitrary>], iteration_bounds = array<i64: 1>, scalar_prefetch = 0 : i64, scratch_operands = 0 : i64, tpu.core_type = #tpu.core_type<tc>, window_params = [{transform_indices = @transform_0, window_bounds = array<i64: 12>}, {pipeline_mode = #tpu.pipeline_mode<synchronous>, transform_indices = @transform_1, window_bounds = array<i64: 4, 128>}, {pipeline_mode = #tpu.pipeline_mode<synchronous>, transform_indices = @transform_2, window_bounds = array<i64: 4, 128>}, {pipeline_mode = #tpu.pipeline_mode<synchronous>, transform_indices = @transform_3, window_bounds = array<i64: 4, 128>}, {pipeline_mode = #tpu.pipeline_mode<synchronous>, transform_indices = @transform_4, window_bounds = array<i64: 4, 128>}]} {
    %c0 = arith.constant 0 : index
    %0 = memref.load %arg1[%c0] : memref<12xf32, #tpu.memory_space<smem>>
    %c6 = arith.constant 6 : index
    %1 = memref.load %arg1[%c6] : memref<12xf32, #tpu.memory_space<smem>>
    %c7 = arith.constant 7 : index
    %2 = memref.load %arg1[%c7] : memref<12xf32, #tpu.memory_space<smem>>
    %c0_0 = arith.constant 0 : index
    %c0_1 = arith.constant 0 : index
    %3 = vector.load %arg2[%c0_0, %c0_1] : memref<4x128xf32, #tpu.memory_space<vmem>>, vector<4x128xf32>
    %cst = arith.constant dense<0.000000e+00> : vector<128xf32>
    %4 = vector.multi_reduction <add>, %3, %cst [0] : vector<4x128xf32> to vector<128xf32>
    %5 = vector.shape_cast %4 : vector<128xf32> to vector<1x128xf32>
    %6 = arith.mulf %3, %3 : vector<4x128xf32>
    %cst_2 = arith.constant dense<0.000000e+00> : vector<128xf32>
    %7 = vector.multi_reduction <add>, %6, %cst_2 [0] : vector<4x128xf32> to vector<128xf32>
    %8 = vector.shape_cast %7 : vector<128xf32> to vector<1x128xf32>
    %cst_3 = arith.constant dense<0.000000e+00> : vector<1xf32>
    %9 = vector.multi_reduction <add>, %5, %cst_3 [1] : vector<1x128xf32> to vector<1xf32>
    %10 = vector.shape_cast %9 : vector<1xf32> to vector<1x1xf32>
    %cst_4 = arith.constant 0.001953125 : f32
    %11 = vector.broadcast %cst_4 : f32 to vector<1x1xf32>
    %12 = arith.mulf %10, %11 : vector<1x1xf32>
    %cst_5 = arith.constant dense<0.000000e+00> : vector<1xf32>
    %13 = vector.multi_reduction <add>, %8, %cst_5 [1] : vector<1x128xf32> to vector<1xf32>
    %14 = vector.shape_cast %13 : vector<1xf32> to vector<1x1xf32>
    %cst_6 = arith.constant 0.001953125 : f32
    %15 = vector.broadcast %cst_6 : f32 to vector<1x1xf32>
    %16 = arith.mulf %14, %15 : vector<1x1xf32>
    %17 = arith.mulf %12, %12 : vector<1x1xf32>
    %18 = arith.subf %16, %17 : vector<1x1xf32>
    %cst_7 = arith.constant 0.000000e+00 : f32
    %19 = vector.broadcast %cst_7 : f32 to vector<1x1xf32>
    %20 = arith.maximumf %18, %19 : vector<1x1xf32>
    %21 = arith.mulf %0, %1 : f32
    %22 = arith.mulf %0, %0 : f32
    %23 = vector.broadcast %22 : f32 to vector<1x1xf32>
    %24 = arith.mulf %23, %20 : vector<1x1xf32>
    %cst_8 = arith.constant 9.99999974E-6 : f32
    %25 = vector.broadcast %cst_8 : f32 to vector<1x1xf32>
    %26 = arith.addf %24, %25 : vector<1x1xf32>
    %27 = math.rsqrt %26 : vector<1x1xf32>
    %28 = vector.broadcast %21 : f32 to vector<1x1xf32>
    %29 = arith.mulf %28, %27 : vector<1x1xf32>
    %30 = arith.mulf %12, %29 : vector<1x1xf32>
    %31 = vector.broadcast %2 : f32 to vector<1x1xf32>
    %32 = arith.subf %31, %30 : vector<1x1xf32>
    %33 = vector.broadcast %29 : vector<1x1xf32> to vector<4x128xf32>
    %34 = arith.mulf %3, %33 : vector<4x128xf32>
    %35 = vector.broadcast %32 : vector<1x1xf32> to vector<4x128xf32>
    %36 = arith.addf %34, %35 : vector<4x128xf32>
    %cst_9 = arith.constant 0.000000e+00 : f32
    %37 = vector.broadcast %cst_9 : f32 to vector<4x128xf32>
    %38 = arith.maximumf %36, %37 : vector<4x128xf32>
    %c2 = arith.constant 2 : index
    %39 = memref.load %arg1[%c2] : memref<12xf32, #tpu.memory_space<smem>>
    %c8 = arith.constant 8 : index
    %40 = memref.load %arg1[%c8] : memref<12xf32, #tpu.memory_space<smem>>
    %c9 = arith.constant 9 : index
    %41 = memref.load %arg1[%c9] : memref<12xf32, #tpu.memory_space<smem>>
    %c0_10 = arith.constant 0 : index
    %c0_11 = arith.constant 0 : index
    %42 = vector.load %arg3[%c0_10, %c0_11] : memref<4x128xf32, #tpu.memory_space<vmem>>, vector<4x128xf32>
    %cst_12 = arith.constant dense<0.000000e+00> : vector<128xf32>
    %43 = vector.multi_reduction <add>, %42, %cst_12 [0] : vector<4x128xf32> to vector<128xf32>
    %44 = vector.shape_cast %43 : vector<128xf32> to vector<1x128xf32>
    %45 = arith.mulf %42, %42 : vector<4x128xf32>
    %cst_13 = arith.constant dense<0.000000e+00> : vector<128xf32>
    %46 = vector.multi_reduction <add>, %45, %cst_13 [0] : vector<4x128xf32> to vector<128xf32>
    %47 = vector.shape_cast %46 : vector<128xf32> to vector<1x128xf32>
    %cst_14 = arith.constant dense<0.000000e+00> : vector<1xf32>
    %48 = vector.multi_reduction <add>, %44, %cst_14 [1] : vector<1x128xf32> to vector<1xf32>
    %49 = vector.shape_cast %48 : vector<1xf32> to vector<1x1xf32>
    %cst_15 = arith.constant 0.001953125 : f32
    %50 = vector.broadcast %cst_15 : f32 to vector<1x1xf32>
    %51 = arith.mulf %49, %50 : vector<1x1xf32>
    %cst_16 = arith.constant dense<0.000000e+00> : vector<1xf32>
    %52 = vector.multi_reduction <add>, %47, %cst_16 [1] : vector<1x128xf32> to vector<1xf32>
    %53 = vector.shape_cast %52 : vector<1xf32> to vector<1x1xf32>
    %cst_17 = arith.constant 0.001953125 : f32
    %54 = vector.broadcast %cst_17 : f32 to vector<1x1xf32>
    %55 = arith.mulf %53, %54 : vector<1x1xf32>
    %56 = arith.mulf %51, %51 : vector<1x1xf32>
    %57 = arith.subf %55, %56 : vector<1x1xf32>
    %cst_18 = arith.constant 0.000000e+00 : f32
    %58 = vector.broadcast %cst_18 : f32 to vector<1x1xf32>
    %59 = arith.maximumf %57, %58 : vector<1x1xf32>
    %60 = arith.mulf %39, %40 : f32
    %61 = arith.mulf %39, %39 : f32
    %62 = vector.broadcast %61 : f32 to vector<1x1xf32>
    %63 = arith.mulf %62, %59 : vector<1x1xf32>
    %cst_19 = arith.constant 9.99999974E-6 : f32
    %64 = vector.broadcast %cst_19 : f32 to vector<1x1xf32>
    %65 = arith.addf %63, %64 : vector<1x1xf32>
    %66 = math.rsqrt %65 : vector<1x1xf32>
    %67 = vector.broadcast %60 : f32 to vector<1x1xf32>
    %68 = arith.mulf %67, %66 : vector<1x1xf32>
    %69 = arith.mulf %51, %68 : vector<1x1xf32>
    %70 = vector.broadcast %41 : f32 to vector<1x1xf32>
    %71 = arith.subf %70, %69 : vector<1x1xf32>
    %72 = vector.broadcast %68 : vector<1x1xf32> to vector<4x128xf32>
    %73 = arith.mulf %42, %72 : vector<4x128xf32>
    %74 = vector.broadcast %71 : vector<1x1xf32> to vector<4x128xf32>
    %75 = arith.addf %73, %74 : vector<4x128xf32>
    %cst_20 = arith.constant 0.000000e+00 : f32
    %76 = vector.broadcast %cst_20 : f32 to vector<4x128xf32>
    %77 = arith.maximumf %75, %76 : vector<4x128xf32>
    %c4 = arith.constant 4 : index
    %78 = memref.load %arg1[%c4] : memref<12xf32, #tpu.memory_space<smem>>
    %c10 = arith.constant 10 : index
    %79 = memref.load %arg1[%c10] : memref<12xf32, #tpu.memory_space<smem>>
    %c11 = arith.constant 11 : index
    %80 = memref.load %arg1[%c11] : memref<12xf32, #tpu.memory_space<smem>>
    %c0_21 = arith.constant 0 : index
    %c0_22 = arith.constant 0 : index
    %81 = vector.load %arg4[%c0_21, %c0_22] : memref<4x128xf32, #tpu.memory_space<vmem>>, vector<4x128xf32>
    %cst_23 = arith.constant dense<0.000000e+00> : vector<128xf32>
    %82 = vector.multi_reduction <add>, %81, %cst_23 [0] : vector<4x128xf32> to vector<128xf32>
    %83 = vector.shape_cast %82 : vector<128xf32> to vector<1x128xf32>
    %84 = arith.mulf %81, %81 : vector<4x128xf32>
    %cst_24 = arith.constant dense<0.000000e+00> : vector<128xf32>
    %85 = vector.multi_reduction <add>, %84, %cst_24 [0] : vector<4x128xf32> to vector<128xf32>
    %86 = vector.shape_cast %85 : vector<128xf32> to vector<1x128xf32>
    %cst_25 = arith.constant dense<0.000000e+00> : vector<1xf32>
    %87 = vector.multi_reduction <add>, %83, %cst_25 [1] : vector<1x128xf32> to vector<1xf32>
    %88 = vector.shape_cast %87 : vector<1xf32> to vector<1x1xf32>
    %cst_26 = arith.constant 0.001953125 : f32
    %89 = vector.broadcast %cst_26 : f32 to vector<1x1xf32>
    %90 = arith.mulf %88, %89 : vector<1x1xf32>
    %cst_27 = arith.constant dense<0.000000e+00> : vector<1xf32>
    %91 = vector.multi_reduction <add>, %86, %cst_27 [1] : vector<1x128xf32> to vector<1xf32>
    %92 = vector.shape_cast %91 : vector<1xf32> to vector<1x1xf32>
    %cst_28 = arith.constant 0.001953125 : f32
    %93 = vector.broadcast %cst_28 : f32 to vector<1x1xf32>
    %94 = arith.mulf %92, %93 : vector<1x1xf32>
    %95 = arith.mulf %90, %90 : vector<1x1xf32>
    %96 = arith.subf %94, %95 : vector<1x1xf32>
    %cst_29 = arith.constant 0.000000e+00 : f32
    %97 = vector.broadcast %cst_29 : f32 to vector<1x1xf32>
    %98 = arith.maximumf %96, %97 : vector<1x1xf32>
    %99 = arith.mulf %78, %79 : f32
    %100 = arith.mulf %78, %78 : f32
    %101 = vector.broadcast %100 : f32 to vector<1x1xf32>
    %102 = arith.mulf %101, %98 : vector<1x1xf32>
    %cst_30 = arith.constant 9.99999974E-6 : f32
    %103 = vector.broadcast %cst_30 : f32 to vector<1x1xf32>
    %104 = arith.addf %102, %103 : vector<1x1xf32>
    %105 = math.rsqrt %104 : vector<1x1xf32>
    %106 = vector.broadcast %99 : f32 to vector<1x1xf32>
    %107 = arith.mulf %106, %105 : vector<1x1xf32>
    %108 = arith.mulf %90, %107 : vector<1x1xf32>
    %109 = vector.broadcast %80 : f32 to vector<1x1xf32>
    %110 = arith.subf %109, %108 : vector<1x1xf32>
    %111 = vector.broadcast %107 : vector<1x1xf32> to vector<4x128xf32>
    %112 = arith.mulf %81, %111 : vector<4x128xf32>
    %113 = vector.broadcast %110 : vector<1x1xf32> to vector<4x128xf32>
    %114 = arith.addf %112, %113 : vector<4x128xf32>
    %cst_31 = arith.constant 0.000000e+00 : f32
    %115 = vector.broadcast %cst_31 : f32 to vector<4x128xf32>
    %116 = arith.maximumf %114, %115 : vector<4x128xf32>
    %117 = arith.addf %38, %77 : vector<4x128xf32>
    %118 = arith.addf %117, %116 : vector<4x128xf32>
    %c0_32 = arith.constant 0 : index
    %c0_33 = arith.constant 0 : index
    %119 = vector.load %arg5[%c0_32, %c0_33] : memref<4x128xf32, #tpu.memory_space<vmem>>, vector<4x128xf32>
    tpu.vector_store %arg5[%c0_32, %c0_33], %118 {strides = array<i32>} : memref<4x128xf32, #tpu.memory_space<vmem>>, vector<4x128xf32>,
    return
  }
  func.func @transform_0(%arg0: i32) -> i32 {
    %c0_i32 = arith.constant 0 : i32
    %c0_i32_0 = arith.constant 0 : i32
    return %c0_i32 : i32
  }
  func.func @transform_1(%arg0: i32) -> (i32, i32) {
    %c0_i32 = arith.constant 0 : i32
    %c0_i32_0 = arith.constant 0 : i32
    %c0_i32_1 = arith.constant 0 : i32
    return %c0_i32, %c0_i32_0 : i32, i32
  }
  func.func @transform_2(%arg0: i32) -> (i32, i32) {
    %c0_i32 = arith.constant 0 : i32
    %c0_i32_0 = arith.constant 0 : i32
    %c0_i32_1 = arith.constant 0 : i32
    return %c0_i32, %c0_i32_0 : i32, i32
  }
  func.func @transform_3(%arg0: i32) -> (i32, i32) {
    %c0_i32 = arith.constant 0 : i32
    %c0_i32_0 = arith.constant 0 : i32
    %c0_i32_1 = arith.constant 0 : i32
    return %c0_i32, %c0_i32_0 : i32, i32
  }
  func.func @transform_4(%arg0: i32) -> (i32, i32) {
    %c0_i32 = arith.constant 0 : i32
    %c0_i32_0 = arith.constant 0 : i32
    %c0_i32_1 = arith.constant 0 : i32
    return %c0_i32, %c0_i32_0 : i32, i32
  }
}

</mosaic_0001>

<bundles_post_ra>
// kernel: multiple_inputs_conv_second_moment_net.1
= control target key start
LH: loop header
LB: loop body
LE: loop exit
PB: predicated region body
PF: predicated region fallthrough
CT: control target
= control target key end

     0   :  { %9 = vsyncpa [#allocation3], 0  ;;  %s274_s0 = inlined_call_operand.vmem [shape: f32[12], index: 0, kind: input, shape index: {}]   ;;  %s275_s1 = inlined_call_operand.vmem [shape: f32[4,128], index: 1, kind: input, shape index: {}]   ;;  %s276_s2 = inlined_call_operand.vmem [shape: f32[4,128], index: 2, kind: input, shape index: {}]   ;;  %s277_s3 = inlined_call_operand.vmem [shape: f32[4,128], index: 3, kind: input, shape index: {}]   ;;  %s278_s4 = inlined_call_operand.vmem [shape: f32[4,128], index: 4, kind: output, shape index: {}]  }
   0x1   :  { %s16_s17 = sshll.u32 %s274_s0, 4  ;;  %s17_s17 = int_to_ptr.vmem [resolvable:$true] %s16_s17 }
   0x2   :  { %s180_s18 = scalar_lea.vmem %s17_s17, 16  ;;  %p185_p1 = scmp.lt.s32.totalorder %s17_s17, %s17_s17 }
   0x3   :  { %p181_p0 = scmp.ne.s32.totalorder %s17_s17, %s180_s18  ;;  %p186_p2 = scmp.lt.s32.totalorder %s180_s18, %s180_s18 }
   0x5   :  { %p187_p3 = por %p186_p2, %p185_p1 }
   0x7   :  { %p188_p4 = pnand %p187_p3, %p181_p0 }
   0x9   :  { %191 = shalt.err (!%p188_p4)
}
   0xa   :  { %s194_s19 = smov [#allocation2]  }
   0xb   :  { %19 = dma.vmem_to_smem %s17_s17, 16, %s194_s19, [#allocation3]  }
   0xc   :  { %192 = dma.done.wait [#allocation3], 16  }
   0xd   :  { %193 = vsyncadd [#allocation3], 4294967280 }
   0xe   :  { %29 = sfence }
   0xf   :  { %v226_v0 = vld [vmem:[%s275_s1] sm:$0xf]  ;;  %vm34_vm0 = vcmask 1043456   ;;  %s259_s25 = sld [smem:[#allocation2 + $0x4]] }
  0x10   :  { %v231_v1 = vld [vmem:[%s276_s2] sm:$0xf]  ;;  %v35_v2 = vsel %vm34_vm0, %v226_v0, 0.0  ;;  %v42_v3 = vmul.f32 %v226_v0, %v226_v0  ;;  %s253_s2 = sld [smem:[#allocation2]] }
  0x11   :  { %v77_v4 = vsel %vm34_vm0, %v231_v1, 0.0  ;;  %v84_v5 = vmul.f32 %v231_v1, %v231_v1  ;;  %v244_v6 = vld [vmem:[%s277_s3] sm:$0xf]  ;;  %v36_v7 = vrot.slane %v35_v2, 4  ;;  %s255_s3 = sld [smem:[#allocation2 + $0x2]] }
  0x12   :  { %v78_v8 = vrot.slane %v77_v4, 4  ;;  %v119_v9 = vsel %vm34_vm0, %v244_v6, 0.0  ;;  %v126_v10 = vmul.f32 %v244_v6, %v244_v6  ;;  %v43_v11 = vsel %vm34_vm0, %v42_v3, 0.0  ;;  %s165_s28 = sld [smem:[#allocation2 + $0x6]] }
  0x13   :  { %v85_v12 = vsel %vm34_vm0, %v84_v5, 0.0  ;;  %v120_v13 = vrot.slane %v119_v9, 4  ;;  %v37_v14 = vadd.f32 %v36_v7, %v35_v2  ;;  %v44_v15 = vrot.slane %v43_v11, 4  ;;  %s168_s29 = sld [smem:[#allocation2 + $0x8]] }
  0x14   :  { %v79_v16 = vadd.f32 %v78_v8, %v77_v4  ;;  %v86_v17 = vrot.slane %v85_v12, 4  ;;  %v127_v19 = vsel %vm34_vm0, %v126_v10, 0.0  ;;  %s171_s5 = sld [smem:[#allocation2 + $0xa]] }
  0x15   :  { %v121_v18 = vadd.f32 %v120_v13, %v119_v9  ;;  %v38_v20 = vrot.slane %v37_v14, 2  ;;  %v45_v21 = vadd.f32 %v44_v15, %v43_v11  ;;  %v128_v25 = vrot.slane %v127_v19, 4  ;;  %s144_s27 = smul.f32 %s259_s25, %s259_s25  ;;  %s166_s6 = sld [smem:[#allocation2 + $0x7]] }
  0x16   :  { %v80_v22 = vrot.slane %v79_v16, 2  ;;  %v87_v23 = vadd.f32 %v86_v17, %v85_v12  ;;  %s60_s24 = smul.f32 %s253_s2, %s253_s2  ;;  %s169_s7 = sld [smem:[#allocation2 + $0x9]] }
  0x17   :  { %v122_v24 = vrot.slane %v121_v18, 2  ;;  %v39_v26 = vadd.f32 %v38_v20, %v37_v14  ;;  %v46_v27 = vrot.slane %v45_v21, 2  ;;  %v129_v31 = vadd.f32 %v128_v25, %v127_v19  ;;  %s102_s26 = smul.f32 %s255_s3, %s255_s3  ;;  %s172_s9 = sld [smem:[#allocation2 + $0xb]] }
  0x18   :  { %v81_v28 = vadd.f32 %v80_v22, %v79_v16  ;;  %v88_v29 = vrot.slane %v87_v23, 2  ;;  %v61_v56 = vstv %s60_s24  ;;  %v145_v12 = vstv %s144_s27  ;;  %s59_s30 = smul.f32 %s165_s28, %s253_s2 }
  0x19   :  { %v123_v30 = vadd.f32 %v122_v24, %v121_v18  ;;  %v40_v32 = vrot.slane %v39_v26, 1  ;;  %v47_v33 = vadd.f32 %v46_v27, %v45_v21  ;;  %v130_v36 = vrot.slane %v129_v31, 2  ;;  %s101_s8 = smul.f32 %s168_s29, %s255_s3 }
  0x1a   :  { %v82_v34 = vrot.slane %v81_v28, 1  ;;  %v89_v35 = vadd.f32 %v88_v29, %v87_v23  ;;  %v103_v3 = vstv %s102_s26  ;;  %v65_v17 = vstv %s59_s30  ;;  %s143_s10 = smul.f32 %s171_s5, %s259_s25 }
  0x1b   :  { %v41_v37 = vadd.f32 %v40_v32, %v39_v26  ;;  %v48_v38 = vrot.slane %v47_v33, 1  ;;  %v131_v40 = vadd.f32 %v130_v36, %v129_v31  ;;  %v124_v43 = vrot.slane %v123_v30, 1 }
  0x1c   :  { %v90_v39 = vrot.slane %v89_v35, 1  ;;  %v83_v42 = vadd.f32 %v82_v34, %v81_v28  ;;  %v107_v20 = vstv %s101_s8  ;;  %v68_v23 = vstv %s166_s6 }
  0x1d   :  { %50 = vadd.xlane.f32.xlu0 %v41_v37  ;;  %v49_v41 = vadd.f32 %v48_v38, %v47_v33  ;;  %v132_v45 = vrot.slane %v131_v40, 1  ;;  %v125_v46 = vadd.f32 %v124_v43, %v123_v30  ;;  %v110_v25 = vstv %s169_s7 }
  0x1e   :  { %v91_v44 = vadd.f32 %v90_v39, %v89_v35  ;;  %v149_v26 = vstv %s143_s10  ;;  %v152_v34 = vstv %s172_s9 }
  0x1f   :  { %53 = vadd.xlane.f32.xlu1 %v49_v41  ;;  %v133_v47 = vadd.f32 %v132_v45, %v131_v40 }
  0x21   :  { %92 = vadd.xlane.f32.xlu0 %v83_v42 }
  0x23   :  { %95 = vadd.xlane.f32.xlu1 %v91_v44 }
  0x25   :  { %134 = vadd.xlane.f32.xlu0 %v125_v46 }
  0x27   :  { %137 = vadd.xlane.f32.xlu1 %v133_v47 }
  0xa6   :  { %v51_v48 = vpop.xlane.xlu0 %50 }
  0xa7   :  { %v52_v49 = vmul.f32 0.001953125, %v51_v48 }
  0xa8   :  { %v54_v50 = vpop.xlane.xlu1 %53 }
  0xa9   :  { %v56_v51 = vmul.f32 %v52_v49, %v52_v49  ;;  %v55_v52 = vmul.f32 0.001953125, %v54_v50 }
  0xaa   :  { %v93_v53 = vpop.xlane.xlu0 %92 }
  0xab   :  { %v57_v54 = vsub.f32 %v55_v52, %v56_v51  ;;  %v94_v55 = vmul.f32 0.001953125, %v93_v53 }
  0xac   :  { %v96_v57 = vpop.xlane.xlu1 %95 }
  0xad   :  { %v58_v58 = vmax.f32 %v57_v54, 0.0  ;;  %v98_v59 = vmul.f32 %v94_v55, %v94_v55  ;;  %v97_v60 = vmul.f32 0.001953125, %v96_v57 }
  0xae   :  { %v135_v61 = vpop.xlane.xlu0 %134 }
  0xaf   :  { %v62_v62 = vmul.f32 %v61_v56, %v58_v58  ;;  %v99_v63 = vsub.f32 %v97_v60, %v98_v59  ;;  %v136_v2 = vmul.f32 0.001953125, %v135_v61 }
  0xb0   :  { %v138_v4 = vpop.xlane.xlu1 %137 }
  0xb1   :  { %v63_v5 = vadd.f32 1e-05, %v62_v62  ;;  %v100_v7 = vmax.f32 %v99_v63, 0.0  ;;  %v140_v8 = vmul.f32 %v136_v2, %v136_v2  ;;  %v139_v9 = vmul.f32 0.001953125, %v138_v4 }
  0xb3   :  { %174 = vrsqrt.f32 %v63_v5  ;;  %v104_v10 = vmul.f32 %v103_v3, %v100_v7  ;;  %v141_v11 = vsub.f32 %v139_v9, %v140_v8 }
  0xb5   :  { %v105_v13 = vadd.f32 1e-05, %v104_v10  ;;  %v142_v14 = vmax.f32 %v141_v11, 0.0 }
  0xb7   :  { %176 = vrsqrt.f32 %v105_v13  ;;  %v146_v15 = vmul.f32 %v145_v12, %v142_v14 }
  0xb9   :  { %v147_v16 = vadd.f32 1e-05, %v146_v15 }
  0xbb   :  { %178 = vrsqrt.f32 %v147_v16 }
  0xc0   :  { %v175_v18 = vpop.eup %174 }
  0xc1   :  { %v66_v19 = vmul.f32 %v175_v18, %v65_v17 }
  0xc3   :  { %v67_v21 = vmul.f32 %v66_v19, %v52_v49  ;;  %v70_v30 = vmul.f32 %v66_v19, %v226_v0 }
  0xc4   :  { %v177_v22 = vpop.eup %176 }
  0xc5   :  { %v108_v24 = vmul.f32 %v177_v22, %v107_v20  ;;  %v69_v27 = vsub.f32 %v68_v23, %v67_v21 }
  0xc7   :  { %v109_v28 = vmul.f32 %v108_v24, %v94_v55  ;;  %v112_v32 = vmul.f32 %v108_v24, %v231_v1  ;;  %v71_v35 = vadd.f32 %v70_v30, %v69_v27 }
  0xc8   :  { %v179_v29 = vpop.eup %178 }
  0xc9   :  { %v111_v31 = vsub.f32 %v110_v25, %v109_v28  ;;  %v150_v33 = vmul.f32 %v179_v29, %v149_v26  ;;  %v72_v41 = vmax.f32 %v71_v35, 0.0 }
  0xcb   :  { %v113_v36 = vadd.f32 %v112_v32, %v111_v31  ;;  %v151_v37 = vmul.f32 %v150_v33, %v136_v2  ;;  %v154_v40 = vmul.f32 %v150_v33, %v244_v6 }
  0xcd   :  { %v114_v38 = vmax.f32 %v113_v36, 0.0  ;;  %v153_v39 = vsub.f32 %v152_v34, %v151_v37 }
  0xcf   :  { %v155_v42 = vadd.f32 %v154_v40, %v153_v39  ;;  %v157_v43 = vadd.f32 %v114_v38, %v72_v41 }
  0xd1   :  { %v156_v44 = vmax.f32 %v155_v42, 0.0 }
  0xd3   :  { %v158_v45 = vadd.f32 %v157_v43, %v156_v44 }
  0xd5   :  { %159 = vst [vmem:[%s278_s4] sm:$0xf] %v158_v45 }
  0xd6   :  { %164 = vsyncpa [#allocation3], 1 }

</bundles_post_ra>
